<compile_context>
chip_gen: v7x
topology: tpu7x:2x2x1
jax: 0.10.0
libtpu: 0.0.40
codegen_flags: <defaults>
</compile_context>

<pallas_src>
import functools

import jax
import jax.numpy as jnp
from jax.experimental import pallas as pl
from jax.experimental.pallas import tpu as pltpu

NEWS_DIM = 400  # fixed by the module


def _make_click_kernel(K):
    """Kernel over K views (K = 2 or 3, static -> fully unrolled)."""

    def kernel(*refs):
        x_refs = refs[:K]                       # each (TM, D), native dtype
        w1_ref, b1_ref, w2_ref, b2_ref, o_ref = refs[K:]

        w1_bf = w1_ref[...]                     # (D, H) bf16, resident in VMEM
        b1 = b1_ref[...]                        # (1, H) f32
        w2_row = w2_ref[...]                    # (1, H) f32
        b2 = b2_ref[0]                          # scalar (SMEM)

        xs = [x_refs[k][...] for k in range(K)]

        # Attention scores per view.  The H-wide projection hits the MXU in bf16
        # (f32 accumulate); the width-1 projection is a VPU multiply + XLU
        # cross-lane reduce (avoids an N=1 MXU matmul).
        alphas = []
        for k in range(K):
            xk_mxu = xs[k].astype(jnp.bfloat16)
            e = jnp.tanh(
                jnp.dot(xk_mxu, w1_bf, preferred_element_type=jnp.float32) + b1)  # (TM, H)
            s = jnp.sum(e * w2_row, axis=-1, keepdims=True) + b2                  # (TM, 1)
            # NOTE: exp without max-subtraction, faithful to the PyTorch module.
            alphas.append(jnp.exp(s))

        denom = alphas[0]
        for a in alphas[1:]:
            denom = denom + a
        inv = pl.reciprocal(denom + jnp.float32(1e-8), approx=False)              # (TM, 1)

        # Normalize the (TM,1) scalars, not the (TM,D) slab.
        out = (alphas[0] * inv) * xs[0]
        for k in range(1, K):
            out = out + (alphas[k] * inv) * xs[k]
        o_ref[...] = out.astype(o_ref.dtype)

    return kernel


def _tile_and_vmem(M, K, D, H, dtype, tile_m=None):
    """Pick row tile, grid length and a VMEM budget per TPU generation."""
    try:
        info = pltpu.get_tpu_info()
        vmem_cap = int(getattr(info, "vmem_capacity_bytes", 64 << 20))
    except Exception:  # pragma: no cover - conservative fallback off-TPU / old JAX
        vmem_cap = 64 << 20
    big_vmem = vmem_cap >= (96 << 20)           # v5e/v6e: 128 MiB; v7x: 64 MiB

    if tile_m is None:
        tile_m = 2048 if big_vmem else 1024
    cap = (64 << 20) if big_vmem else (48 << 20)

    if M <= tile_m:
        tm = M                                  # full-extent block -> always layout-legal
    else:
        tm = tile_m                             # multiple of 16 -> valid f32/bf16 packing
    grid_m = pl.cdiv(M, tm)

    # v7x megacore: prefer >=2 grid steps when there is enough work so the
    # "parallel" axis shards across both TensorCores.
    if (not big_vmem) and grid_m == 1 and M >= 512:
        tm = ((M + 1) // 2 + 15) // 16 * 16
        grid_m = pl.cdiv(M, tm)

    # VMEM estimate: (K inputs + 1 output) double-buffered blocks + resident
    # weights + (TM, H) f32 intermediates + headroom.
    itemsize = jnp.dtype(dtype).itemsize
    lane_d = ((D + 127) // 128) * 128
    lane_h = ((H + 127) // 128) * 128
    sub_m = ((tm + 7) // 8) * 8
    blk = sub_m * lane_d * itemsize
    weights = 2 * (((D + 7) // 8) * 8) * lane_h * 2 + 4 * 8 * lane_h * 4
    interm = 4 * sub_m * lane_h * 4
    est = (K + 1) * 2 * blk + weights + interm + (12 << 20)
    vmem_limit = int(min(max(est, 16 << 20), cap))

    return tm, grid_m, vmem_limit


def click_encoder_pallas(title, graph, entity=None, *, params, tile_m=None):
    """title/graph/entity: (B, N, NEWS_DIM). Returns (B, N, NEWS_DIM)."""
    w1, b1, w2, b2 = params
    B, N, D = title.shape
    assert D == NEWS_DIM
    M = B * N

    views = [title, graph] if entity is None else [title, graph, entity]
    K = len(views)
    views_2d = [v.reshape(M, D) for v in views]   # free: leading-dim collapse

    H = w1.shape[1]
    w1_bf = w1.astype(jnp.bfloat16)               # bf16 copy for the MXU score matmul
    b1_2d = b1.reshape(1, H).astype(jnp.float32)
    w2_row = w2.reshape(1, H).astype(jnp.float32)  # used as a row vector (VPU reduce)
    b2_1d = b2.reshape(1).astype(jnp.float32)      # scalar -> SMEM

    tm, grid_m, vmem_limit = _tile_and_vmem(M, K, D, H, title.dtype, tile_m)

    view_spec = pl.BlockSpec((tm, D), lambda i: (i, 0))
    out = pl.pallas_call(
        _make_click_kernel(K),
        out_shape=jax.ShapeDtypeStruct((M, D), title.dtype),
        grid_spec=pltpu.PrefetchScalarGridSpec(
            num_scalar_prefetch=0,
            grid=(grid_m,),
            in_specs=[view_spec] * K + [
                pl.BlockSpec((D, H), lambda i: (0, 0)),                 # W1 (bf16, resident)
                pl.BlockSpec((1, H), lambda i: (0, 0)),                 # b1
                pl.BlockSpec((1, H), lambda i: (0, 0)),                 # w2 row
                pl.BlockSpec(memory_space=pltpu.MemorySpace.SMEM),      # b2 scalar
            ],
            out_specs=pl.BlockSpec((tm, D), lambda i: (i, 0)),
        ),
        compiler_params=pltpu.CompilerParams(
            dimension_semantics=("parallel",),
            vmem_limit_bytes=vmem_limit,
        ),
    )(*views_2d, w1_bf, b1_2d, w2_row, b2_1d)

    return out.reshape(B, N, D)


def click_encoder_reference(title, graph, entity, params):
    """Pure-JAX f32 reference mirroring the PyTorch AttentionPooling math."""
    w1, b1, w2, b2 = params
    B, N, D = title.shape
    x = jnp.stack([title, graph, entity], axis=-2).reshape(-1, 3, D)  # (M, 3, D)
    e = jnp.tanh(jnp.einsum("mkd,dh->mkh", x, w1) + b1)
    alpha = jnp.exp(jnp.einsum("mkh,ho->mko", e, w2) + b2)            # (M, 3, 1)
    alpha = alpha / (jnp.sum(alpha, axis=1, keepdims=True) + 1e-8)
    out = jnp.sum(alpha * x, axis=1)                                  # (M, D)
    return out.reshape(B, N, D)


def init_params(key, d=NEWS_DIM, h=32, dtype=jnp.float32):
    # nn.Linear-style uniform init, deterministic from the provided key.
    k1, k2, k3, k4 = jax.random.split(key, 4)
    lim1 = 1.0 / (d ** 0.5)
    lim2 = 1.0 / (h ** 0.5)
    w1 = jax.random.uniform(k1, (d, h), dtype, -lim1, lim1)
    b1 = jax.random.uniform(k2, (h,), dtype, -lim1, lim1)
    w2 = jax.random.uniform(k3, (h, 1), dtype, -lim2, lim2)
    b2 = jax.random.uniform(k4, (1,), dtype, -lim2, lim2)
    return w1, b1, w2, b2


if __name__ == "__main__":
    key = jax.random.PRNGKey(0)
    kt, kg, ke, kp = jax.random.split(key, 4)

    B, N, D, H = 2, 8, NEWS_DIM, 32  # small example: attention_hidden_dim = 32
    title = jax.random.normal(kt, (B, N, D), jnp.float32)
    graph = jax.random.normal(kg, (B, N, D), jnp.float32)
    entity = jax.random.normal(ke, (B, N, D), jnp.float32)

    params = init_params(kp, d=D, h=H)

    run = jax.jit(functools.partial(click_encoder_pallas, params=params))
    out = run(title, graph, entity)
    out = jax.block_until_ready(out)

    ref = click_encoder_reference(title, graph, entity, params)
    assert out.shape == (B, N, D)
    # bf16 score matmul shifts the attention weights by ~1e-3 relative; the output
    # is still a convex combination of the full-precision inputs, so errors stay small.
    assert jnp.allclose(out, ref, atol=2e-2, rtol=2e-2), "mismatch vs reference"

    print("KERNEL_OK")
</pallas_src>

<mosaic_0001>
module attributes {stable_mosaic.version = 11 : i64} {
  func.func @kernel(%arg0: i32, %arg1: memref<16x400xf32, #tpu.memory_space<vmem>>, %arg2: memref<16x400xf32, #tpu.memory_space<vmem>>, %arg3: memref<16x400xf32, #tpu.memory_space<vmem>>, %arg4: memref<400x32xbf16, #tpu.memory_space<vmem>>, %arg5: memref<1x32xf32, #tpu.memory_space<vmem>>, %arg6: memref<1x32xf32, #tpu.memory_space<vmem>>, %arg7: memref<1xf32, #tpu.memory_space<smem>>, %arg8: memref<16x400xf32, #tpu.memory_space<vmem>>) attributes {dimension_semantics = [#tpu.dimension_semantics<parallel>], iteration_bounds = array<i64: 1>, scalar_prefetch = 0 : i64, scratch_operands = 0 : i64, tpu.core_type = #tpu.core_type<tc>, window_params = [{transform_indices = @transform_0, window_bounds = array<i64: 16, 400>}, {transform_indices = @transform_1, window_bounds = array<i64: 16, 400>}, {transform_indices = @transform_2, window_bounds = array<i64: 16, 400>}, {pipeline_mode = #tpu.pipeline_mode<synchronous>, transform_indices = @transform_3, window_bounds = array<i64: 400, 32>}, {pipeline_mode = #tpu.pipeline_mode<synchronous>, transform_indices = @transform_4, window_bounds = array<i64: 1, 32>}, {pipeline_mode = #tpu.pipeline_mode<synchronous>, transform_indices = @transform_5, window_bounds = array<i64: 1, 32>}, {transform_indices = @transform_6, window_bounds = array<i64: 1>}, {transform_indices = @transform_7, window_bounds = array<i64: 16, 400>}]} {
    %c0 = arith.constant 0 : index
    %c0_0 = arith.constant 0 : index
    %0 = vector.load %arg4[%c0, %c0_0] : memref<400x32xbf16, #tpu.memory_space<vmem>>, vector<400x32xbf16>
    %c0_1 = arith.constant 0 : index
    %c0_2 = arith.constant 0 : index
    %1 = vector.load %arg5[%c0_1, %c0_2] : memref<1x32xf32, #tpu.memory_space<vmem>>, vector<1x32xf32>
    %c0_3 = arith.constant 0 : index
    %c0_4 = arith.constant 0 : index
    %2 = vector.load %arg6[%c0_3, %c0_4] : memref<1x32xf32, #tpu.memory_space<vmem>>, vector<1x32xf32>
    %c0_5 = arith.constant 0 : index
    %3 = memref.load %arg7[%c0_5] : memref<1xf32, #tpu.memory_space<smem>>
    %c0_6 = arith.constant 0 : index
    %c0_7 = arith.constant 0 : index
    %4 = vector.load %arg1[%c0_6, %c0_7] : memref<16x400xf32, #tpu.memory_space<vmem>>, vector<16x400xf32>
    %c0_8 = arith.constant 0 : index
    %c0_9 = arith.constant 0 : index
    %5 = vector.load %arg2[%c0_8, %c0_9] : memref<16x400xf32, #tpu.memory_space<vmem>>, vector<16x400xf32>
    %c0_10 = arith.constant 0 : index
    %c0_11 = arith.constant 0 : index
    %6 = vector.load %arg3[%c0_10, %c0_11] : memref<16x400xf32, #tpu.memory_space<vmem>>, vector<16x400xf32>
    %7 = arith.truncf %4 : vector<16x400xf32> to vector<16x400xbf16>
    %cst = arith.constant dense<0.000000e+00> : vector<16x32xf32>
    %8 = tpu.matmul %7, %0, %cst {dimension_numbers = #tpu.dot_dimension_numbers<[1], [0], [0], [1], [0, 0, 1, 1], [], []>} : vector<16x400xbf16>, vector<400x32xbf16>, vector<16x32xf32> -> vector<16x32xf32>
    %9 = vector.broadcast %1 : vector<1x32xf32> to vector<16x32xf32>
    %10 = arith.addf %8, %9 : vector<16x32xf32>
    %11 = math.tanh %10 : vector<16x32xf32>
    %12 = vector.broadcast %2 : vector<1x32xf32> to vector<16x32xf32>
    %13 = arith.mulf %11, %12 : vector<16x32xf32>
    %cst_12 = arith.constant dense<0.000000e+00> : vector<16xf32>
    %14 = vector.multi_reduction <add>, %13, %cst_12 [1] : vector<16x32xf32> to vector<16xf32>
    %15 = vector.shape_cast %14 : vector<16xf32> to vector<16x1xf32>
    %16 = vector.broadcast %3 : f32 to vector<16x1xf32>
    %17 = arith.addf %15, %16 : vector<16x1xf32>
    %18 = math.exp %17 : vector<16x1xf32>
    %19 = arith.truncf %5 : vector<16x400xf32> to vector<16x400xbf16>
    %cst_13 = arith.constant dense<0.000000e+00> : vector<16x32xf32>
    %20 = tpu.matmul %19, %0, %cst_13 {dimension_numbers = #tpu.dot_dimension_numbers<[1], [0], [0], [1], [0, 0, 1, 1], [], []>} : vector<16x400xbf16>, vector<400x32xbf16>, vector<16x32xf32> -> vector<16x32xf32>
    %21 = vector.broadcast %1 : vector<1x32xf32> to vector<16x32xf32>
    %22 = arith.addf %20, %21 : vector<16x32xf32>
    %23 = math.tanh %22 : vector<16x32xf32>
    %24 = vector.broadcast %2 : vector<1x32xf32> to vector<16x32xf32>
    %25 = arith.mulf %23, %24 : vector<16x32xf32>
    %cst_14 = arith.constant dense<0.000000e+00> : vector<16xf32>
    %26 = vector.multi_reduction <add>, %25, %cst_14 [1] : vector<16x32xf32> to vector<16xf32>
    %27 = vector.shape_cast %26 : vector<16xf32> to vector<16x1xf32>
    %28 = vector.broadcast %3 : f32 to vector<16x1xf32>
    %29 = arith.addf %27, %28 : vector<16x1xf32>
    %30 = math.exp %29 : vector<16x1xf32>
    %31 = arith.truncf %6 : vector<16x400xf32> to vector<16x400xbf16>
    %cst_15 = arith.constant dense<0.000000e+00> : vector<16x32xf32>
    %32 = tpu.matmul %31, %0, %cst_15 {dimension_numbers = #tpu.dot_dimension_numbers<[1], [0], [0], [1], [0, 0, 1, 1], [], []>} : vector<16x400xbf16>, vector<400x32xbf16>, vector<16x32xf32> -> vector<16x32xf32>
    %33 = vector.broadcast %1 : vector<1x32xf32> to vector<16x32xf32>
    %34 = arith.addf %32, %33 : vector<16x32xf32>
    %35 = math.tanh %34 : vector<16x32xf32>
    %36 = vector.broadcast %2 : vector<1x32xf32> to vector<16x32xf32>
    %37 = arith.mulf %35, %36 : vector<16x32xf32>
    %cst_16 = arith.constant dense<0.000000e+00> : vector<16xf32>
    %38 = vector.multi_reduction <add>, %37, %cst_16 [1] : vector<16x32xf32> to vector<16xf32>
    %39 = vector.shape_cast %38 : vector<16xf32> to vector<16x1xf32>
    %40 = vector.broadcast %3 : f32 to vector<16x1xf32>
    %41 = arith.addf %39, %40 : vector<16x1xf32>
    %42 = math.exp %41 : vector<16x1xf32>
    %43 = arith.addf %18, %30 : vector<16x1xf32>
    %44 = arith.addf %43, %42 : vector<16x1xf32>
    %cst_17 = arith.constant 9.99999993E-9 : f32
    %45 = vector.broadcast %cst_17 : f32 to vector<16x1xf32>
    %46 = arith.addf %44, %45 : vector<16x1xf32>
    %47 = tpu.reciprocal %46 : vector<16x1xf32> -> vector<16x1xf32>
    %48 = arith.mulf %18, %47 : vector<16x1xf32>
    %49 = vector.broadcast %48 : vector<16x1xf32> to vector<16x400xf32>
    %50 = arith.mulf %49, %4 : vector<16x400xf32>
    %51 = arith.mulf %30, %47 : vector<16x1xf32>
    %52 = vector.broadcast %51 : vector<16x1xf32> to vector<16x400xf32>
    %53 = arith.mulf %52, %5 : vector<16x400xf32>
    %54 = arith.addf %50, %53 : vector<16x400xf32>
    %55 = arith.mulf %42, %47 : vector<16x1xf32>
    %56 = vector.broadcast %55 : vector<16x1xf32> to vector<16x400xf32>
    %57 = arith.mulf %56, %6 : vector<16x400xf32>
    %58 = arith.addf %54, %57 : vector<16x400xf32>
    %c0_18 = arith.constant 0 : index
    %c0_19 = arith.constant 0 : index
    %59 = vector.load %arg8[%c0_18, %c0_19] : memref<16x400xf32, #tpu.memory_space<vmem>>, vector<16x400xf32>
    tpu.vector_store %arg8[%c0_18, %c0_19], %58 {strides = array<i32>} : memref<16x400xf32, #tpu.memory_space<vmem>>, vector<16x400xf32>,
    return
  }
  func.func @transform_0(%arg0: i32) -> (i32, i32) {
    %c0_i32 = arith.constant 0 : i32
    %c0_i32_0 = arith.constant 0 : i32
    return %arg0, %c0_i32 : i32, i32
  }
  func.func @transform_1(%arg0: i32) -> (i32, i32) {
    %c0_i32 = arith.constant 0 : i32
    %c0_i32_0 = arith.constant 0 : i32
    return %arg0, %c0_i32 : i32, i32
  }
  func.func @transform_2(%arg0: i32) -> (i32, i32) {
    %c0_i32 = arith.constant 0 : i32
    %c0_i32_0 = arith.constant 0 : i32
    return %arg0, %c0_i32 : i32, i32
  }
  func.func @transform_3(%arg0: i32) -> (i32, i32) {
    %c0_i32 = arith.constant 0 : i32
    %c0_i32_0 = arith.constant 0 : i32
    %c0_i32_1 = arith.constant 0 : i32
    return %c0_i32, %c0_i32_0 : i32, i32
  }
  func.func @transform_4(%arg0: i32) -> (i32, i32) {
    %c0_i32 = arith.constant 0 : i32
    %c0_i32_0 = arith.constant 0 : i32
    %c0_i32_1 = arith.constant 0 : i32
    return %c0_i32, %c0_i32_0 : i32, i32
  }
  func.func @transform_5(%arg0: i32) -> (i32, i32) {
    %c0_i32 = arith.constant 0 : i32
    %c0_i32_0 = arith.constant 0 : i32
    %c0_i32_1 = arith.constant 0 : i32
    return %c0_i32, %c0_i32_0 : i32, i32
  }
  func.func @transform_6(%arg0: i32) -> i32 {
    %c0_i32 = arith.constant 0 : i32
    %c0_i32_0 = arith.constant 0 : i32
    return %c0_i32 : i32
  }
  func.func @transform_7(%arg0: i32) -> (i32, i32) {
    %c0_i32 = arith.constant 0 : i32
    %c0_i32_0 = arith.constant 0 : i32
    return %arg0, %c0_i32 : i32, i32
  }
}

</mosaic_0001>

<bundles_post_ra>
// kernel: click_encoder_pallas.1
= control target key start
LH: loop header
LB: loop body
LE: loop exit
PB: predicated region body
PF: predicated region fallthrough
CT: control target
= control target key end

     0   :  { %13 = vsyncpa [#allocation4], 0  ;;  %s1403_s0 = inlined_call_operand.hbm [shape: f32[16,400], index: 0, kind: input, shape index: {}]   ;;  %s1404_s1 = inlined_call_operand.hbm [shape: f32[16,400], index: 1, kind: input, shape index: {}]   ;;  %s1405_s2 = inlined_call_operand.hbm [shape: f32[16,400], index: 2, kind: input, shape index: {}]   ;;  %s1406_s3 = inlined_call_operand.hbm [shape: bf16[400,32], index: 3, kind: input, shape index: {}]   ;;  %s1407_s4 = inlined_call_operand.vmem [shape: f32[1,32], index: 4, kind: input, shape index: {}]   ;;  %s1408_s5 = inlined_call_operand.vmem [shape: f32[1,32], index: 5, kind: input, shape index: {}]   ;;  %s1409_s6 = inlined_call_operand.<no memory space> [shape: f32[1], index: 6, kind: input, shape index: {}]   ;;  %s1410_s7 = inlined_call_operand.hbm [shape: f32[16,400], index: 7, kind: output, shape index: {}]  }
   0x1   :  { %14 = vsyncpa [#allocation7], 0 }
   0x2   :  { %15 = vsyncpa [#allocation10], 0 }
   0x3   :  { %16 = vsyncpa [#allocation5], 0  ;;  %s999_s24 = smov [#allocation6]   ;;  %s1000_s26 = smov [#allocation3]  }
   0x4   :  { %s34_s25 = sshll.u32 %s999_s24, 4  ;;  %s22_s27 = sshll.u32 %s1000_s26, 4  ;;  %s35_s25 = int_to_ptr.vmem [resolvable:$true] %s34_s25  ;;  %s1049_s27 = int_to_ptr.vmem [resolvable:$true] %s22_s27 }
   0x5   :  { %s881_s30 = scalar_lea.hbm %s1404_s1, 1024 }
   0x6   :  { %p882_p0 = scmp.ne.s32.totalorder %s1404_s1, %s881_s30  ;;  %p885_p1 = scmp.lt.u32.totalorder %s881_s30, %s1404_s1 }
   0x8   :  { %p887_p2 = pnand %p885_p1, %p882_p0 }
   0xa   :  { %890 = shalt.err (!%p887_p2)
}
   0xb   :  { %s891_s12 = scalar_lea.vmem %s35_s25, 1024  ;;  %p896_p4 = scmp.lt.s32.totalorder %s35_s25, %s35_s25 }
   0xc   :  { %p892_p3 = scmp.ne.s32.totalorder %s35_s25, %s891_s12  ;;  %p897_p5 = scmp.lt.s32.totalorder %s891_s12, %s891_s12 }
   0xe   :  { %p898_p6 = por %p897_p5, %p896_p4 }
  0x10   :  { %p899_p7 = pnand %p898_p6, %p892_p3 }
  0x12   :  { %902 = shalt.err (!%p899_p7)
}
  0x13   :  { %s1001_s13 = smov 512   ;;  %s1002_s14 = smov 32  }
  0x14   :  { %40 = dma.hbm_to_vmem [thread:$0]  %s1404_s1, 1024, %s35_s25, [#allocation7], %s1001_s13, %s1001_s13, %s1002_s14  }
  0x15   :  { %s903_s19 = scalar_lea.hbm %s1403_s0, 1024 }
  0x16   :  { %p904_p8 = scmp.ne.s32.totalorder %s1403_s0, %s903_s19  ;;  %p907_p9 = scmp.lt.u32.totalorder %s903_s19, %s1403_s0 }
  0x18   :  { %p909_p10 = pnand %p907_p9, %p904_p8 }
  0x1a   :  { %912 = shalt.err (!%p909_p10)
}
  0x1b   :  { %s913_s24 = scalar_lea.vmem %s1049_s27, 1024  ;;  %p918_p12 = scmp.lt.s32.totalorder %s1049_s27, %s1049_s27 }
  0x1c   :  { %p914_p11 = scmp.ne.s32.totalorder %s1049_s27, %s913_s24  ;;  %p919_p13 = scmp.lt.s32.totalorder %s913_s24, %s913_s24 }
  0x1e   :  { %p920_p0 = por %p919_p13, %p918_p12 }
  0x20   :  { %p921_p1 = pnand %p920_p0, %p914_p11 }
  0x22   :  { %924 = shalt.err (!%p921_p1)
}
  0x23   :  { %28 = dma.hbm_to_vmem [thread:$0]  %s1403_s0, 1024, %s1049_s27, [#allocation4], %s1001_s13, %s1001_s13, %s1002_s14  }
  0x24   :  { %s1003_s26 = smov [#allocation8]   ;;  %s1004_s29 = smov [#allocation9]  }
  0x25   :  { %s46_s28 = sshll.u32 %s1003_s26, 4  ;;  %s58_s30 = sshll.u32 %s1004_s29, 4  ;;  %s47_s28 = int_to_ptr.vmem [resolvable:$true] %s46_s28  ;;  %s1086_s30 = int_to_ptr.vmem [resolvable:$true] %s58_s30 }
  0x26   :  { %s925_s10 = scalar_lea.hbm %s1405_s2, 1024 }
  0x27   :  { %p926_p2 = scmp.ne.s32.totalorder %s1405_s2, %s925_s10  ;;  %p929_p3 = scmp.lt.u32.totalorder %s925_s10, %s1405_s2 }
  0x29   :  { %p931_p4 = pnand %p929_p3, %p926_p2 }
  0x2b   :  { %934 = shalt.err (!%p931_p4)
}
  0x2c   :  { %s935_s0 = scalar_lea.vmem %s47_s28, 1024  ;;  %p940_p6 = scmp.lt.s32.totalorder %s47_s28, %s47_s28 }
  0x2d   :  { %p936_p5 = scmp.ne.s32.totalorder %s47_s28, %s935_s0  ;;  %p941_p7 = scmp.lt.s32.totalorder %s935_s0, %s935_s0 }
  0x2f   :  { %p942_p8 = por %p941_p7, %p940_p6 }
  0x31   :  { %p943_p9 = pnand %p942_p8, %p936_p5 }
  0x33   :  { %946 = shalt.err (!%p943_p9)
}
  0x34   :  { %52 = dma.hbm_to_vmem [thread:$0]  %s1405_s2, 1024, %s47_s28, [#allocation7], %s1001_s13, %s1001_s13, %s1002_s14  }
  0x35   :  { %s947_s20 = scalar_lea.hbm %s1406_s3, 3200 }
  0x36   :  { %p948_p10 = scmp.ne.s32.totalorder %s1406_s3, %s947_s20  ;;  %p951_p11 = scmp.lt.u32.totalorder %s947_s20, %s1406_s3 }
  0x38   :  { %p953_p12 = pnand %p951_p11, %p948_p10 }
  0x3a   :  { %956 = shalt.err (!%p953_p12)
}
  0x3b   :  { %s957_s1 = scalar_lea.vmem %s1086_s30, 3200  ;;  %p962_p0 = scmp.lt.s32.totalorder %s1086_s30, %s1086_s30 }
  0x3c   :  { %p958_p13 = scmp.ne.s32.totalorder %s1086_s30, %s957_s1  ;;  %p963_p1 = scmp.lt.s32.totalorder %s957_s1, %s957_s1 }
  0x3e   :  { %p964_p2 = por %p963_p1, %p962_p0 }
  0x40   :  { %p965_p3 = pnand %p964_p2, %p958_p13 }
  0x42   :  { %968 = shalt.err (!%p965_p3)
}
  0x43   :  { %s1005_s2 = smov 64   ;;  %s1006_s25 = smov 4  }
  0x44   :  { %64 = dma.hbm_to_vmem [thread:$0]  %s1406_s3, 3200, %s1086_s30, [#allocation10], %s1005_s2, %s1005_s2, %s1006_s25  }
  0x45   :  { %991 = dma.done.wait [#allocation4], 1024  }
  0x46   :  { %992 = vsyncadd [#allocation4], 4294966272 }
  0x47   :  { %993 = dma.done.wait [#allocation7], 2048  }
  0x48   :  { %994 = vsyncadd [#allocation7], 4294965248 }
  0x49   :  { %995 = dma.done.wait [#allocation10], 3200  }
  0x4a   :  { %996 = vsyncadd [#allocation10], 4294964096  ;;  %v1007_v0 = vmov 0   ;;  %v1121_v1 = vld [vmem:[#allocation9 + $0x40] sm:$0xff]   ;;  %v1129_v4 = vld [vmem:[#allocation9 + $0x48] sm:$0xff]   ;;  %vm321_vm0 = vcmask 130048  }
  0x4b   :  { %366 = vmatprep.subr.bf16.mxu1 %v1007_v0  ;;  %v1123_v2 = vld [vmem:[#allocation9 + $0x80] sm:$0xff]   ;;  %752 = vmatprep.subr.bf16.mxu0 %v1121_v1  ;;  %v1133_v5 = vld [vmem:[#allocation9 + $0x88] sm:$0xff]   ;;  %v1138_v7 = vld [vmem:[#allocation9 + $0x50] sm:$0xff]   ;;  %vm417_vm1 = vcmask 261120  }
  0x4c   :  { %v1126_v3 = vld [vmem:[#allocation9] sm:$0xff]   ;;  %367 = vmatpush1.bf16.msra.mxu1 %v1123_v2  ;;  %v1136_v6 = vld [vmem:[#allocation9 + $0x8] sm:$0xff]   ;;  %v1141_v8 = vld [vmem:[#allocation9 + $0x90] sm:$0xff]  }
  0x4d   :  { %753 = vmatpush3.bf16.msra.mxu0 %v1126_v3  ;;  %368 = vmatprep.subr.bf16.mxu1 %v1007_v0  ;;  %v1145_v9 = vld [vmem:[#allocation9 + $0x10] sm:$0xff]   ;;  %v1148_v10 = vld [vmem:[#allocation9 + $0x58] sm:$0xff]   ;;  %v1158_v13 = vld [vmem:[#allocation9 + $0x60] sm:$0xff]  }
  0x4e   :  { %754 = vmatprep.subr.bf16.mxu0 %v1129_v4  ;;  %v1151_v11 = vld [vmem:[#allocation9 + $0x98] sm:$0xff]   ;;  %v1161_v14 = vld [vmem:[#allocation9 + $0xa0] sm:$0xff]   ;;  %v1168_v16 = vld [vmem:[#allocation9 + $0x68] sm:$0xff]  }
  0x4f   :  { %v1155_v12 = vld [vmem:[#allocation9 + $0x18] sm:$0xff]   ;;  %v1165_v15 = vld [vmem:[#allocation9 + $0x20] sm:$0xff]   ;;  %v1171_v17 = vld [vmem:[#allocation9 + $0xa8] sm:$0xff]  }
  0x50   :  { %369 = vmatpush1.bf16.msra.mxu1 %v1133_v5  ;;  %v1175_v18 = vld [vmem:[#allocation9 + $0x28] sm:$0xff]   ;;  %v1178_v19 = vld [vmem:[#allocation9 + $0x70] sm:$0xff]   ;;  %v1192_v24 = vld [vmem:[#allocation9 + $0x78] sm:$0xff]  }
  0x51   :  { %755 = vmatpush3.bf16.msra.mxu0 %v1136_v6  ;;  %370 = vmatprep.subr.bf16.mxu1 %v1007_v0  ;;  %v1181_v20 = vld [vmem:[#allocation9 + $0xb0] sm:$0xff]   ;;  %v1187_v22 = vld [vmem:[#allocation3 + $0x8] sm:$0xff]  ;;  %v1196_v26 = vld [vmem:[#allocation3 + $0x18] sm:$0xff] }
  0x52   :  { %756 = vmatprep.subr.bf16.mxu0 %v1138_v7  ;;  %v1185_v21 = vld [vmem:[#allocation9 + $0x30] sm:$0xff]   ;;  %v1189_v23 = vld [vmem:[#allocation3 + $0x28] sm:$0xff]  ;;  %v1198_v27 = vld [vmem:[#allocation3 + $0x38] sm:$0xff] }
  0x53   :  { %v162_v25 = vpack.c.bf16 %v1189_v23, %v1187_v22  ;;  %v1201_v28 = vld [vmem:[#allocation9 + $0xb8] sm:$0xff]   ;;  %v164_v29 = vpack.c.bf16 %v1198_v27, %v1196_v26  ;;  %v1209_v31 = vld [vmem:[#allocation3] sm:$0xff]  ;;  %v1215_v33 = vld [vmem:[#allocation6 + $0x8] sm:$0xff] }
  0x54   :  { %371 = vmatpush1.bf16.msra.mxu1 %v1141_v8  ;;  %v1207_v30 = vld [vmem:[#allocation9 + $0x38] sm:$0xff]   ;;  %v1211_v32 = vld [vmem:[#allocation3 + $0x20] sm:$0xff]  ;;  %v1217_v34 = vld [vmem:[#allocation6 + $0x28] sm:$0xff] }
  0x55   :  { %757 = vmatpush3.bf16.msra.mxu0 %v1145_v9  ;;  %372 = vmatprep.subr.bf16.mxu1 %v1007_v0  ;;  %v161_v35 = vpack.c.bf16 %v1211_v32, %v1209_v31  ;;  %v1222_v36 = vld [vmem:[#allocation9 + $0xc0] sm:$0xff]   ;;  %v1224_v37 = vld [vmem:[#allocation3 + $0x10] sm:$0xff]  ;;  %v1230_v39 = vld [vmem:[#allocation6 + $0x18] sm:$0xff]  ;;  %v432_v41 = vpack.c.bf16 %v1217_v34, %v1215_v33 }
  0x56   :  { %758 = vmatprep.subr.bf16.mxu0 %v1148_v10  ;;  %357 = vmatprep.mubr.bf16.mxu0 %v162_v25  ;;  %v1226_v38 = vld [vmem:[#allocation3 + $0x30] sm:$0xff]  ;;  %v1232_v40 = vld [vmem:[#allocation6 + $0x38] sm:$0xff]  ;;  %v1269_v44 = vld [vmem:[#allocation6] sm:$0xff] }
  0x57   :  { %748 = vmatprep.mubr.msk.bf16.mxu1 %vm321_vm0, %v164_v29  ;;  %v163_v42 = vpack.c.bf16 %v1226_v38, %v1224_v37  ;;  %v434_v43 = vpack.c.bf16 %v1232_v40, %v1230_v39  ;;  %v1271_v45 = vld [vmem:[#allocation6 + $0x20] sm:$0xff]  ;;  %v1274_v46 = vld [vmem:[#allocation8 + $0x8] sm:$0xff]  ;;  %v1287_v50 = vld [vmem:[#allocation6 + $0x10] sm:$0xff] }
  0x58   :  { %373 = vmatpush1.bf16.msra.mxu1 %v1151_v11  ;;  %v1276_v47 = vld [vmem:[#allocation8 + $0x28] sm:$0xff]  ;;  %v431_v48 = vpack.c.bf16 %v1271_v45, %v1269_v44  ;;  %v1289_v51 = vld [vmem:[#allocation6 + $0x30] sm:$0xff]  ;;  %v1293_v52 = vld [vmem:[#allocation8 + $0x18] sm:$0xff] }
  0x59   :  { %759 = vmatpush3.bf16.msra.mxu0 %v1155_v12  ;;  %374 = vmatprep.subr.bf16.mxu1 %v1007_v0  ;;  %v537_v49 = vpack.c.bf16 %v1276_v47, %v1274_v46  ;;  %v1295_v53 = vld [vmem:[#allocation8 + $0x38] sm:$0xff]  ;;  %v433_v54 = vpack.c.bf16 %v1289_v51, %v1287_v50  ;;  %v1326_v56 = vld [vmem:[#allocation8] sm:$0xff]  ;;  %v1339_v59 = vld [vmem:[#allocation8 + $0x10] sm:$0xff] }
  0x5a   :  { %760 = vmatprep.subr.bf16.mxu0 %v1158_v13  ;;  %v539_v55 = vpack.c.bf16 %v1295_v53, %v1293_v52  ;;  %v1328_v57 = vld [vmem:[#allocation8 + $0x20] sm:$0xff]  ;;  %v1341_v60 = vld [vmem:[#allocation8 + $0x30] sm:$0xff] }
  0x5b   :  { %v536_v58 = vpack.c.bf16 %v1328_v57, %v1326_v56  ;;  %v538_v61 = vpack.c.bf16 %v1341_v60, %v1339_v59 }
  0x5c   :  { %375 = vmatpush1.bf16.msra.mxu1 %v1161_v14 }
  0x5d   :  { %761 = vmatpush3.bf16.msra.mxu0 %v1165_v15  ;;  %376 = vmatprep.subr.bf16.mxu1 %v1007_v0 }
  0x5e   :  { %762 = vmatprep.subr.bf16.mxu0 %v1168_v16 }
  0x60   :  { %377 = vmatpush1.bf16.msra.mxu1 %v1171_v17 }
  0x61   :  { %763 = vmatpush3.bf16.msra.mxu0 %v1175_v18  ;;  %378 = vmatprep.subr.bf16.mxu1 %v1007_v0 }
  0x62   :  { %764 = vmatprep.subr.bf16.mxu0 %v1178_v19 }
  0x64   :  { %379 = vmatpush1.bf16.msra.mxu1 %v1181_v20 }
  0x65   :  { %765 = vmatpush3.bf16.msra.mxu0 %v1185_v21  ;;  %380 = vmatprep.subr.bf16.mxu1 %v1007_v0 }
  0x66   :  { %766 = vmatprep.subr.bf16.mxu0 %v1192_v24 }
  0x68   :  { %381 = vmatpush1.bf16.msra.mxu1 %v1201_v28 }
  0x69   :  { %767 = vmatpush3.bf16.msra.mxu0 %v1207_v30  ;;  %382 = vmatprep.subr.bf16.mxu1 %v1007_v0 }
  0x6a   :  { %774 = vmatprep.subr.bf16.mxu0 %v1121_v1 }
  0x6c   :  { %358 = vmatmul.mubr.bf16.vlgmr.msra.gmra.mrb[0].mxu0 %v161_v35  ;;  %383 = vmatpush1.bf16.msra.mxu1 %v1222_v36 }
  0x6d   :  { %775 = vmatpush3.bf16.msra.mxu0 %v1126_v3  ;;  %479 = vmatprep.subr.bf16.mxu1 %v1007_v0 }
  0x6e   :  { %776 = vmatprep.subr.bf16.mxu0 %v1129_v4  ;;  %470 = vmatprep.mubr.bf16.mxu0 %v432_v41 }
  0x6f   :  { %399 = vmatmul.mubr.bf16.vlgmr.msra.gmra.mrb[0].mxu1 %v163_v42 }
  0x70   :  { %480 = vmatpush1.bf16.msra.mxu1 %v1123_v2  ;;  %750 = vmatprep.mubr.msk.bf16.mxu1 %vm321_vm0, %v434_v43 }
  0x71   :  { %777 = vmatpush3.bf16.msra.mxu0 %v1136_v6  ;;  %481 = vmatprep.subr.bf16.mxu1 %v1007_v0 }
  0x72   :  { %778 = vmatprep.subr.bf16.mxu0 %v1138_v7 }
  0x74   :  { %482 = vmatpush1.bf16.msra.mxu1 %v1133_v5 }
  0x75   :  { %779 = vmatpush3.bf16.msra.mxu0 %v1145_v9  ;;  %483 = vmatprep.subr.bf16.mxu1 %v1007_v0 }
  0x76   :  { %780 = vmatprep.subr.bf16.mxu0 %v1148_v10 }
  0x78   :  { %484 = vmatpush1.bf16.msra.mxu1 %v1141_v8 }
  0x79   :  { %781 = vmatpush3.bf16.msra.mxu0 %v1155_v12  ;;  %485 = vmatprep.subr.bf16.mxu1 %v1007_v0 }
  0x7a   :  { %782 = vmatprep.subr.bf16.mxu0 %v1158_v13 }
  0x7c   :  { %486 = vmatpush1.bf16.msra.mxu1 %v1151_v11 }
  0x7d   :  { %783 = vmatpush3.bf16.msra.mxu0 %v1165_v15  ;;  %487 = vmatprep.subr.bf16.mxu1 %v1007_v0 }
  0x7e   :  { %784 = vmatprep.subr.bf16.mxu0 %v1168_v16 }
  0x80   :  { %488 = vmatpush1.bf16.msra.mxu1 %v1161_v14 }
  0x81   :  { %785 = vmatpush3.bf16.msra.mxu0 %v1175_v18  ;;  %489 = vmatprep.subr.bf16.mxu1 %v1007_v0 }
  0x82   :  { %786 = vmatprep.subr.bf16.mxu0 %v1178_v19 }
  0x84   :  { %490 = vmatpush1.bf16.msra.mxu1 %v1171_v17 }
  0x85   :  { %787 = vmatpush3.bf16.msra.mxu0 %v1185_v21  ;;  %491 = vmatprep.subr.bf16.mxu1 %v1007_v0 }
  0x86   :  { %788 = vmatprep.subr.bf16.mxu0 %v1192_v24 }
  0x88   :  { %492 = vmatpush1.bf16.msra.mxu1 %v1181_v20 }
  0x89   :  { %789 = vmatpush3.bf16.msra.mxu0 %v1207_v30  ;;  %493 = vmatprep.subr.bf16.mxu1 %v1007_v0 }
  0x8a   :  { %796 = vmatprep.subr.bf16.mxu0 %v1121_v1  ;;  %v722_v1 = vld [vmem:[%s1407_s4] ss:$0 sm:$0xff] }
  0x8c   :  { %494 = vmatpush1.bf16.msra.mxu1 %v1201_v28  ;;  %471 = vmatmul.mubr.bf16.vlgmr.msra.gmra.mrb[4].mxu0 %v431_v48 }
  0x8d   :  { %495 = vmatprep.subr.bf16.mxu1 %v1007_v0  ;;  %797 = vmatpush3.bf16.msra.mxu0 %v1126_v3 }
  0x8e   :  { %798 = vmatprep.subr.bf16.mxu0 %v1129_v4  ;;  %575 = vmatprep.mubr.bf16.mxu0 %v537_v49 }
  0x90   :  { %496 = vmatpush1.bf16.msra.mxu1 %v1222_v36 }
  0x91   :  { %584 = vmatprep.subr.bf16.mxu1 %v1007_v0  ;;  %799 = vmatpush3.bf16.msra.mxu0 %v1136_v6 }
  0x92   :  { %800 = vmatprep.subr.bf16.mxu0 %v1138_v7 }
  0x93   :  { %512 = vmatmul.mubr.bf16.vlgmr.msra.gmra.mrb[4].mxu1 %v433_v54 }
  0x94   :  { %585 = vmatpush1.bf16.msra.mxu1 %v1123_v2  ;;  %751 = vmatprep.mubr.msk.bf16.mxu1 %vm321_vm0, %v539_v55 }
  0x95   :  { %586 = vmatprep.subr.bf16.mxu1 %v1007_v0  ;;  %801 = vmatpush3.bf16.msra.mxu0 %v1145_v9 }
  0x96   :  { %802 = vmatprep.subr.bf16.mxu0 %v1148_v10 }
  0x98   :  { %587 = vmatpush1.bf16.msra.mxu1 %v1133_v5 }
  0x99   :  { %588 = vmatprep.subr.bf16.mxu1 %v1007_v0  ;;  %803 = vmatpush3.bf16.msra.mxu0 %v1155_v12 }
  0x9a   :  { %804 = vmatprep.subr.bf16.mxu0 %v1158_v13  ;;  %v749_v13 = vld [vmem:[%s1408_s5] ss:$0 sm:$0xff] }
  0x9c   :  { %589 = vmatpush1.bf16.msra.mxu1 %v1141_v8 }
  0x9d   :  { %590 = vmatprep.subr.bf16.mxu1 %v1007_v0  ;;  %805 = vmatpush3.bf16.msra.mxu0 %v1165_v15 }
  0x9e   :  { %806 = vmatprep.subr.bf16.mxu0 %v1168_v16 }
  0xa0   :  { %591 = vmatpush1.bf16.msra.mxu1 %v1151_v11 }
  0xa1   :  { %592 = vmatprep.subr.bf16.mxu1 %v1007_v0  ;;  %807 = vmatpush3.bf16.msra.mxu0 %v1175_v18 }
  0xa2   :  { %808 = vmatprep.subr.bf16.mxu0 %v1178_v19 }
  0xa4   :  { %593 = vmatpush1.bf16.msra.mxu1 %v1161_v14 }
  0xa5   :  { %594 = vmatprep.subr.bf16.mxu1 %v1007_v0  ;;  %809 = vmatpush3.bf16.msra.mxu0 %v1185_v21 }
  0xa6   :  { %810 = vmatprep.subr.bf16.mxu0 %v1192_v24 }
  0xa8   :  { %595 = vmatpush1.bf16.msra.mxu1 %v1171_v17 }
  0xa9   :  { %596 = vmatprep.subr.bf16.mxu1 %v1007_v0  ;;  %811 = vmatpush3.bf16.msra.mxu0 %v1207_v30 }
  0xac   :  { %597 = vmatpush1.bf16.msra.mxu1 %v1181_v20  ;;  %576 = vmatmul.mubr.bf16.vlgmr.msra.gmra.mrb[8].mxu0 %v536_v58 }
  0xad   :  { %598 = vmatprep.subr.bf16.mxu1 %v1007_v0 }
  0xb0   :  { %599 = vmatpush1.bf16.msra.mxu1 %v1201_v28 }
  0xb1   :  { %600 = vmatprep.subr.bf16.mxu1 %v1007_v0 }
  0xb4   :  { %601 = vmatpush1.bf16.msra.mxu1 %v1222_v36 }
  0xb7   :  { %617 = vmatmul.mubr.bf16.vlgmr.msra.gmra.mrb[8].mxu1 %v538_v61 }
 0x13f   :  { %v768_v62 = vpop.f32.mrb[0].mxu0 }
 0x140   :  { %v769_v63 = vpop.f32.mrb[1].mxu0 }
 0x141   :  { %v770_v2 = vadd.f32 %v769_v63, %v768_v62  ;;  %v771_v3 = vpop.f32.mrb[2].mxu0 }
 0x142   :  { %v772_v4 = vpop.f32.mrb[3].mxu0  ;;  %v400_v5 = vpop.f32.mrb[0].mxu1 }
 0x143   :  { %v773_v6 = vadd.f32 %v772_v4, %v771_v3  ;;  %v360_v7 = vadd.f32 %v770_v2, %v722_v1  ;;  %v402_v8 = vpop.f32.mrb[1].mxu1 }
 0x144   :  { %v403_v0 = vpop.f32.mrb[2].mxu1 }
 0x145   :  { %v401_v9 = vadd.f32 %v400_v5, %v360_v7  ;;  %v363_v10 = vadd.f32 %v773_v6, %v722_v1  ;;  %v405_v11 = vpop.f32.mrb[3].mxu1 }
 0x147   :  { %853 = vtanh.f32 %v401_v9  ;;  %v404_v12 = vadd.f32 %v403_v0, %v363_v10 }
 0x149   :  { %855 = vtanh.f32 %v404_v12 }
 0x151   :  { %v854_v14 = vpop.eup %853 }
 0x152   :  { %v415_v15 = vmul.f32 %v854_v14, %v749_v13 }
 0x153   :  { %v856_v16 = vpop.eup %855 }
 0x154   :  { %v418_v17 = vsel %vm417_vm1, %v415_v15, 0.0  ;;  %v416_v18 = vmul.f32 %v856_v16, %v749_v13 }
 0x155   :  { %419 = vadd.xlane.f32.xlu0 %v418_v17 }
 0x156   :  { %v421_v19 = vsel %vm417_vm1, %v416_v18, 0.0 }
 0x159   :  { %422 = vadd.xlane.f32.xlu0 %v421_v19 }
 0x15f   :  { %v790_v20 = vpop.f32.mrb[4].mxu0 }
 0x160   :  { %v791_v21 = vpop.f32.mrb[5].mxu0 }
 0x161   :  { %v792_v24 = vadd.f32 %v791_v21, %v790_v20  ;;  %v793_v25 = vpop.f32.mrb[6].mxu0 }
 0x162   :  { %v794_v28 = vpop.f32.mrb[7].mxu0 }
 0x163   :  { %v795_v29 = vadd.f32 %v794_v28, %v793_v25  ;;  %v473_v30 = vadd.f32 %v792_v24, %v722_v1 }
 0x165   :  { %v476_v35 = vadd.f32 %v795_v29, %v722_v1 }
 0x166   :  { %v513_v36 = vpop.f32.mrb[4].mxu1 }
 0x167   :  { %v514_v41 = vadd.f32 %v513_v36, %v473_v30  ;;  %v515_v42 = vpop.f32.mrb[5].mxu1 }
 0x168   :  { %v516_v43 = vpop.f32.mrb[6].mxu1 }
 0x169   :  { %857 = vtanh.f32 %v514_v41  ;;  %v517_v48 = vadd.f32 %v516_v43, %v476_v35  ;;  %v518_v49 = vpop.f32.mrb[7].mxu1 }
 0x16b   :  { %859 = vtanh.f32 %v517_v48 }
 0x173   :  { %v858_v54 = vpop.eup %857 }
 0x174   :  { %v522_v55 = vmul.f32 %v858_v54, %v749_v13 }
 0x175   :  { %v860_v58 = vpop.eup %859 }
 0x176   :  { %v524_v61 = vsel %vm417_vm1, %v522_v55, 0.0  ;;  %v523_v62 = vmul.f32 %v860_v58, %v749_v13 }
 0x177   :  { %525 = vadd.xlane.f32.xlu1 %v524_v61 }
 0x178   :  { %v527_v63 = vsel %vm417_vm1, %v523_v62, 0.0 }
 0x17b   :  { %528 = vadd.xlane.f32.xlu1 %v527_v63 }
 0x17f   :  { %v812_v2 = vpop.f32.mrb[8].mxu0 }
 0x180   :  { %v813_v3 = vpop.f32.mrb[9].mxu0 }
 0x181   :  { %v814_v4 = vadd.f32 %v813_v3, %v812_v2  ;;  %v815_v5 = vpop.f32.mrb[10].mxu0 }
 0x182   :  { %v816_v6 = vpop.f32.mrb[11].mxu0 }
 0x183   :  { %v817_v7 = vadd.f32 %v816_v6, %v815_v5  ;;  %v578_v8 = vadd.f32 %v814_v4, %v722_v1 }
 0x185   :  { %v581_v11 = vadd.f32 %v817_v7, %v722_v1  ;;  %v424_v1 = vstv %s1409_s6  ;;  %s1008_s6 = smov [#allocation11]  }
 0x186   :  { %s708_s9 = sshll.u32 %s1008_s6, 4  ;;  %s709_s9 = int_to_ptr.vmem [resolvable:$true] %s708_s9 }
 0x187   :  { %s969_s10 = scalar_lea.vmem %s709_s9, 1024  ;;  %p974_p5 = scmp.lt.s32.totalorder %s709_s9, %s709_s9 }
 0x188   :  { %p970_p4 = scmp.ne.s32.totalorder %s709_s9, %s969_s10  ;;  %p975_p6 = scmp.lt.s32.totalorder %s969_s10, %s969_s10 }
 0x18a   :  { %v618_v0 = vpop.f32.mrb[8].mxu1  ;;  %p976_p7 = por %p975_p6, %p974_p5 }
 0x18b   :  { %v619_v9 = vadd.f32 %v618_v0, %v578_v8  ;;  %v620_v10 = vpop.f32.mrb[9].mxu1 }
 0x18c   :  { %v621_v12 = vpop.f32.mrb[10].mxu1  ;;  %p977_p8 = pnand %p976_p7, %p970_p4 }
 0x18d   :  { %861 = vtanh.f32 %v619_v9  ;;  %v622_v14 = vadd.f32 %v621_v12, %v581_v11  ;;  %v623_v15 = vpop.f32.mrb[11].mxu1 }
 0x18f   :  { %863 = vtanh.f32 %v622_v14 }
 0x197   :  { %v862_v16 = vpop.eup %861 }
 0x198   :  { %v627_v17 = vmul.f32 %v862_v16, %v749_v13 }
 0x199   :  { %v864_v18 = vpop.eup %863 }
 0x19a   :  { %v629_v19 = vsel %vm417_vm1, %v627_v17, 0.0  ;;  %v628_v20 = vmul.f32 %v864_v18, %v749_v13 }
 0x19b   :  { %630 = vadd.xlane.f32.xlu0 %v629_v19 }
 0x19c   :  { %v632_v21 = vsel %vm417_vm1, %v628_v20, 0.0 }
 0x19d   :  { %633 = vadd.xlane.f32.xlu1 %v632_v21 }
 0x1e2   :  { %v420_v25 = vpop.xlane.xlu0 %419 }
 0x1e3   :  { %v425_v35 = vadd.f32 %v424_v1, %v420_v25 }
 0x1e5   :  { %v427_v43 = vmul.f32 1.442695, %v425_v35 }
 0x1e6   :  { %v423_v29 = vpop.xlane.xlu0 %422 }
 0x1e7   :  { %v426_v41 = vadd.f32 %v424_v1, %v423_v29 }
 0x1e9   :  { %v429_v13 = vmul.f32 1.442695, %v426_v41 }
 0x204   :  { %v526_v24 = vpop.xlane.xlu1 %525 }
 0x205   :  { %v530_v30 = vadd.f32 %v526_v24, %v424_v1 }
 0x207   :  { %v532_v42 = vmul.f32 1.442695, %v530_v30 }
 0x208   :  { %v529_v28 = vpop.xlane.xlu1 %528 }
 0x209   :  { %v531_v36 = vadd.f32 %v529_v28, %v424_v1  ;;  %865 = vpow2.f32 %v532_v42 }
 0x20a   :  { %867 = vpow2.f32 %v427_v43 }
 0x20b   :  { %v534_v48 = vmul.f32 1.442695, %v531_v36 }
 0x20d   :  { %869 = vpow2.f32 %v534_v48 }
 0x20e   :  { %871 = vpow2.f32 %v429_v13 }
 0x213   :  { %v866_v63 = vpop.eup %865 }
 0x214   :  { %v868_v2 = vpop.eup %867 }
 0x215   :  { %v641_v5 = vadd.f32 %v868_v2, %v866_v63 }
 0x217   :  { %v870_v3 = vpop.eup %869 }
 0x218   :  { %v872_v4 = vpop.eup %871 }
 0x219   :  { %v642_v7 = vadd.f32 %v872_v4, %v870_v3 }
 0x228   :  { %v631_v49 = vpop.xlane.xlu0 %630 }
 0x229   :  { %v635_v54 = vadd.f32 %v631_v49, %v424_v1 }
 0x22a   :  { %v634_v55 = vpop.xlane.xlu1 %633 }
 0x22b   :  { %v637_v58 = vmul.f32 1.442695, %v635_v54  ;;  %v636_v61 = vadd.f32 %v634_v55, %v424_v1 }
 0x22d   :  { %873 = vpow2.f32 %v637_v58  ;;  %v639_v62 = vmul.f32 1.442695, %v636_v61 }
 0x22f   :  { %875 = vpow2.f32 %v639_v62 }
 0x237   :  { %v874_v6 = vpop.eup %873 }
 0x238   :  { %v643_v8 = vadd.f32 %v874_v6, %v641_v5 }
 0x239   :  { %v876_v0 = vpop.eup %875 }
 0x23a   :  { %v645_v9 = vadd.f32 1e-08, %v643_v8  ;;  %v644_v10 = vadd.f32 %v876_v0, %v642_v7 }
 0x23c   :  { %877 = vrcp.f32 %v645_v9  ;;  %v646_v11 = vadd.f32 1e-08, %v644_v10 }
 0x23e   :  { %879 = vrcp.f32 %v646_v11 }
 0x246   :  { %v878_v12 = vpop.eup %877 }
 0x247   :  { %v649_v14 = vmul.f32 %v878_v12, %v868_v2  ;;  %v659_v15 = vmul.f32 %v878_v12, %v866_v63  ;;  %v677_v16 = vmul.f32 %v878_v12, %v874_v6 }
 0x248   :  { %v880_v21 = vpop.eup %879 }
 0x249   :  { %v651_v17 = vmul.f32 %v649_v14, %v1209_v31  ;;  %v652_v18 = vmul.f32 %v649_v14, %v1187_v22  ;;  %v653_v19 = vmul.f32 %v649_v14, %v1224_v37  ;;  %v654_v20 = vmul.f32 %v649_v14, %v1196_v26 }
 0x24a   :  { %v661_v24 = vmul.f32 %v659_v15, %v1269_v44  ;;  %v662_v25 = vmul.f32 %v659_v15, %v1215_v33  ;;  %v663_v1 = vmul.f32 %v659_v15, %v1287_v50  ;;  %v664_v28 = vmul.f32 %v659_v15, %v1230_v39 }
 0x24b   :  { %v679_v29 = vmul.f32 %v677_v16, %v1326_v56  ;;  %v680_v30 = vmul.f32 %v677_v16, %v1274_v46  ;;  %v681_v31 = vmul.f32 %v677_v16, %v1339_v59  ;;  %v682_v22 = vmul.f32 %v677_v16, %v1293_v52 }
 0x24c   :  { %v669_v37 = vadd.f32 %v661_v24, %v651_v17  ;;  %v670_v35 = vadd.f32 %v662_v25, %v652_v18  ;;  %v671_v26 = vadd.f32 %v663_v1, %v653_v19  ;;  %v672_v36 = vadd.f32 %v664_v28, %v654_v20 }
 0x24d   :  { %v650_v41 = vmul.f32 %v880_v21, %v872_v4  ;;  %v660_v44 = vmul.f32 %v880_v21, %v870_v3  ;;  %v678_v42 = vmul.f32 %v880_v21, %v876_v0 }
 0x24e   :  { %v687_v33 = vadd.f32 %v679_v29, %v669_v37  ;;  %v688_v43 = vadd.f32 %v680_v30, %v670_v35  ;;  %v689_v50 = vadd.f32 %v681_v31, %v671_v26  ;;  %v690_v48 = vadd.f32 %v682_v22, %v672_v36 }
 0x24f   :  { %v655_v39 = vmul.f32 %v650_v41, %v1211_v32  ;;  %v656_v56 = vmul.f32 %v650_v41, %v1189_v23  ;;  %v657_v46 = vmul.f32 %v650_v41, %v1226_v38  ;;  %v658_v59 = vmul.f32 %v650_v41, %v1198_v27 }
 0x250   :  { %695 = vst [vmem:[#allocation11] sm:$0xff] %v687_v33  ;;  %696 = vst [vmem:[#allocation11 + $0x8] sm:$0xff] %v688_v43  ;;  %v665_v52 = vmul.f32 %v660_v44, %v1271_v45  ;;  %v666_v13 = vmul.f32 %v660_v44, %v1217_v34  ;;  %v667_v49 = vmul.f32 %v660_v44, %v1289_v51 }
 0x251   :  { %697 = vst [vmem:[#allocation11 + $0x10] sm:$0xff] %v689_v50  ;;  %698 = vst.msk [vmem:[#allocation11 + $0x18] sm:$0xff] %vm321_vm0, %v690_v48  ;;  %v668_v54 = vmul.f32 %v660_v44, %v1232_v40  ;;  %v683_v32 = vmul.f32 %v678_v42, %v1328_v57  ;;  %v684_v23 = vmul.f32 %v678_v42, %v1276_v47 }
 0x252   :  { %v685_v38 = vmul.f32 %v678_v42, %v1341_v60  ;;  %v686_v27 = vmul.f32 %v678_v42, %v1295_v53  ;;  %v673_v55 = vadd.f32 %v665_v52, %v655_v39  ;;  %v674_v58 = vadd.f32 %v666_v13, %v656_v56 }
 0x253   :  { %v675_v61 = vadd.f32 %v667_v49, %v657_v46  ;;  %v676_v45 = vadd.f32 %v668_v54, %v658_v59 }
 0x254   :  { %v691_v62 = vadd.f32 %v683_v32, %v673_v55  ;;  %v692_v34 = vadd.f32 %v684_v23, %v674_v58 }
 0x255   :  { %v693_v63 = vadd.f32 %v685_v38, %v675_v61  ;;  %v694_v51 = vadd.f32 %v686_v27, %v676_v45 }
 0x256   :  { %699 = vst [vmem:[#allocation11 + $0x20] sm:$0xff] %v691_v62  ;;  %700 = vst [vmem:[#allocation11 + $0x28] sm:$0xff] %v692_v34 }
 0x257   :  { %701 = vst [vmem:[#allocation11 + $0x30] sm:$0xff] %v693_v63  ;;  %702 = vst.msk [vmem:[#allocation11 + $0x38] sm:$0xff] %vm321_vm0, %v694_v51 }
 0x258   :  { %980 = shalt.err (!%p977_p8)
}
 0x259   :  { %s981_s15 = scalar_lea.hbm %s1410_s7, 1024 }
 0x25a   :  { %p982_p9 = scmp.ne.s32.totalorder %s1410_s7, %s981_s15  ;;  %p985_p10 = scmp.lt.u32.totalorder %s981_s15, %s1410_s7 }
 0x25c   :  { %p987_p11 = pnand %p985_p10, %p982_p9 }
 0x25e   :  { %990 = shalt.err (!%p987_p11)
}
 0x25f   :  { %714 = dma.vmem_to_hbm [thread:$0]  %s709_s9, 1024, %s1410_s7, [#allocation5], %s1001_s13, %s1001_s13, %s1002_s14  }
 0x260   :  { %997 = dma.done.wait [#allocation5], 1024  }
 0x261   :  { %998 = vsyncadd [#allocation5], 4294966272 }
 0x262   :  { %718 = vsyncpa [#allocation4], 1 }
 0x263   :  { %719 = vsyncpa [#allocation7], 1 }
 0x264   :  { %720 = vsyncpa [#allocation10], 1 }
 0x265   :  { %721 = vsyncpa [#allocation5], 1 }

</bundles_post_ra>
